<compile_context>
chip_gen: v7x
topology: tpu7x:2x2x1
jax: 0.10.0
libtpu: 0.0.40
codegen_flags: <defaults>
</compile_context>

<pallas_src>
import functools

import jax
import jax.numpy as jnp
from jax import lax
from jax.experimental import pallas as pl
from jax.experimental.pallas import tpu as pltpu


CHUNK = 128     # lane-width of one strip-mined batch sub-chunk
D_PAD = 8       # input feature dim padded 6 -> 8
OUT_PAD = 8     # output sublane dim padded 3 -> 8


def _cdiv(a, b):
    return -(-a // b)


def _dino_kernel(x_ref,
                 w1_ref, b1_ref, w2_ref, b2_ref, w3_ref, b3_ref,
                 w4_ref, b4_ref, w5_ref, b5_ref,
                 o_ref, *, bt_chunks):
    """Whole MLP, transposed: batch lives on the lane axis.

    x_ref: [D_PAD, bt] bf16, o_ref: [OUT_PAD, bt] f32,
    w*_ref: [out, in] bf16 (pre-transposed), b*_ref: [out, 1] f32.
    """

    def layer(h, w_ref, b_ref):
        # bf16 x bf16 -> f32 accumulate on the MXU, f32 bias + ReLU on the
        # VPU, repack to bf16 for the next MXU push.
        y = jnp.dot(w_ref[...], h, preferred_element_type=jnp.float32)
        y = jnp.maximum(y + b_ref[...], 0.0)
        return y.astype(jnp.bfloat16)

    def body(c, carry):
        col = pl.multiple_of(c * CHUNK, CHUNK)
        h = x_ref[:, pl.ds(col, CHUNK)]          # bf16 [8, 128]
        h = layer(h, w1_ref, b1_ref)             # [256, 128]
        # Dropout(0.2): identity at inference time.
        h = layer(h, w2_ref, b2_ref)             # [128, 128]
        h = layer(h, w3_ref, b3_ref)             # [64, 128]
        h = layer(h, w4_ref, b4_ref)             # [32, 128]
        # Final layer: no activation, f32 out, lane-dense 128-wide store.
        out = jnp.dot(w5_ref[...], h, preferred_element_type=jnp.float32)
        out = out + b5_ref[...]
        o_ref[:, pl.ds(col, CHUNK)] = out
        return carry

    lax.fori_loop(0, bt_chunks, body, 0, unroll=True)


def dino_forward(x, params, *, batch_tile=1024):
    """x: [B, 6] float32 -> [B, 3] float32 (eval-mode forward)."""
    B, D_in = x.shape
    assert D_in == 6
    assert batch_tile % CHUNK == 0

    (w1, b1), (w2, b2), (w3, b3), (w4, b4), (w5, b5) = params
    D_out = w5.shape[1]  # 3

    # ---- wrapper-side prep (done once, outside the kernel) -----------------
    # Transpose weights to [out, in], pad layer-1 K-dim 6 -> 8 and layer-5
    # out-dim 3 -> 8, cast to bf16 (MXU-native).  Biases stay f32 columns.
    w1t = jnp.zeros((w1.shape[1], D_PAD), jnp.float32).at[:, :D_in].set(w1.T)
    w5t = jnp.zeros((OUT_PAD, w5.shape[0]), jnp.float32).at[:D_out, :].set(w5.T)
    ws = [w.astype(jnp.bfloat16) for w in (w1t, w2.T, w3.T, w4.T, w5t)]
    b5c = jnp.zeros((OUT_PAD, 1), jnp.float32).at[:D_out, :].set(b5.reshape(-1, 1))
    bs = [b.reshape(-1, 1).astype(jnp.float32) for b in (b1, b2, b3, b4)] + [b5c]

    # ---- batch tiling -------------------------------------------------------
    n_chunks_total = _cdiv(max(B, 1), CHUNK)
    bt_chunks = min(batch_tile // CHUNK, n_chunks_total)
    if n_chunks_total >= 2:
        # Keep >= 2 grid steps so v7x megacore can shard the parallel axis.
        bt_chunks = min(bt_chunks, _cdiv(n_chunks_total, 2))
    bt = bt_chunks * CHUNK
    grid_steps = _cdiv(n_chunks_total, bt_chunks)
    B_pad = grid_steps * bt

    # Pad batch + feature dims, transpose so batch is the lane axis: [8, B_pad].
    xp = jnp.pad(x, ((0, B_pad - B), (0, D_PAD - D_in)))
    x_t = xp.T.astype(jnp.bfloat16)

    x_spec = pl.BlockSpec((D_PAD, bt), lambda i: (0, i))
    out_spec = pl.BlockSpec((OUT_PAD, bt), lambda i: (0, i))

    # Constant block index for every weight/bias: the Pallas TPU pipeline skips
    # the re-copy when the block index is unchanged across steps, so the
    # ~95 KiB of bf16 weights is DMA'd HBM -> VMEM once and stays resident.
    const_map = lambda i: (0, 0)
    wb_specs, wb_args = [], []
    for w, b in zip(ws, bs):
        wb_specs.append(pl.BlockSpec(w.shape, const_map))
        wb_specs.append(pl.BlockSpec(b.shape, const_map))
        wb_args.extend((w, b))

    dims = [D_PAD, 256, 128, 64, 32, OUT_PAD]
    flops = 2 * B_pad * sum(dims[i] * dims[i + 1] for i in range(5))
    wb_bytes = sum(int(w.size) * 2 + int(b.size) * 4 for w, b in zip(ws, bs))
    bytes_accessed = B_pad * D_PAD * 2 + B_pad * OUT_PAD * 4 + wb_bytes

    out_t = pl.pallas_call(
        functools.partial(_dino_kernel, bt_chunks=bt_chunks),
        out_shape=jax.ShapeDtypeStruct((OUT_PAD, B_pad), jnp.float32),
        grid=(grid_steps,),
        in_specs=[x_spec] + wb_specs,
        out_specs=out_spec,
        compiler_params=pltpu.CompilerParams(
            dimension_semantics=("parallel",)),
        cost_estimate=pl.CostEstimate(
            flops=int(flops), transcendentals=0,
            bytes_accessed=int(bytes_accessed)),
    )(x_t, *wb_args)

    # Slice off padded output sublanes / padded batch lanes, back to [B, 3].
    return out_t[:D_out, :B].T


def init_params(key):
    """Deterministic init mimicking torch.nn.Linear default (U[-1/sqrt(fan_in), +1/sqrt(fan_in)])."""
    dims = [6, 256, 128, 64, 32, 3]
    params = []
    for i in range(len(dims) - 1):
        fan_in, fan_out = dims[i], dims[i + 1]
        key, kw, kb = jax.random.split(key, 3)
        bound = 1.0 / jnp.sqrt(jnp.float32(fan_in))
        w = jax.random.uniform(kw, (fan_in, fan_out), jnp.float32, -bound, bound)
        b = jax.random.uniform(kb, (1, fan_out), jnp.float32, -bound, bound)
        params.append((w, b))
    return params


def reference_forward(x, params, dtype=jnp.float32):
    """Pure-JAX reference. dtype=bfloat16 mirrors the kernel's cast policy."""
    h = x.astype(dtype)
    n = len(params)
    for i, (w, b) in enumerate(params):
        h = jnp.dot(h, w.astype(dtype), preferred_element_type=jnp.float32)
        h = h + b.astype(jnp.float32)
        if i < n - 1:
            h = jnp.maximum(h, 0.0).astype(dtype)
    return h.astype(jnp.float32)


if __name__ == "__main__":
    key = jax.random.PRNGKey(0)
    key, kx1, kx2 = jax.random.split(key, 3)
    params = init_params(key)

    B1 = 100   # < one chunk: single grid step, single in-kernel sub-chunk
    x1 = jax.random.normal(kx1, (B1, 6), jnp.float32)
    B2 = 777   # ragged batch: multi-step grid + in-kernel strip-mining
    x2 = jax.random.normal(kx2, (B2, 6), jnp.float32)

    out1 = jax.block_until_ready(dino_forward(x1, params))                   # grid=1
    out2 = jax.block_until_ready(dino_forward(x2, params))                   # grid=2, 4 chunks/step
    out3 = jax.block_until_ready(dino_forward(x2, params, batch_tile=256))   # grid=4, 2 chunks/step

    assert out1.shape == (B1, 3), out1.shape
    assert out2.shape == (B2, 3), out2.shape
    assert out3.shape == (B2, 3), out3.shape

    for out, xin in ((out1, x1), (out2, x2), (out3, x2)):
        ref_bf16 = reference_forward(xin, params, dtype=jnp.bfloat16)
        ref_f32 = reference_forward(xin, params, dtype=jnp.float32)
        # Tight check against a reference mirroring the kernel's bf16 casts.
        assert jnp.allclose(out, ref_bf16, atol=1e-2, rtol=1e-2), \
            f"max abs err vs bf16 ref: {jnp.max(jnp.abs(out - ref_bf16))}"
        # Loose sanity check against the pure-f32 (PyTorch-equivalent) forward.
        assert jnp.allclose(out, ref_f32, atol=5e-2, rtol=5e-2), \
            f"max abs err vs f32 ref: {jnp.max(jnp.abs(out - ref_f32))}"

    print("KERNEL_OK")
</pallas_src>

<mosaic_0001>
module attributes {stable_mosaic.version = 11 : i64} {
  func.func @_dino_kernel(%arg0: i32, %arg1: memref<8x128xbf16, #tpu.memory_space<vmem>>, %arg2: memref<256x8xbf16, #tpu.memory_space<vmem>>, %arg3: memref<256x1xf32, #tpu.memory_space<vmem>>, %arg4: memref<128x256xbf16, #tpu.memory_space<vmem>>, %arg5: memref<128x1xf32, #tpu.memory_space<vmem>>, %arg6: memref<64x128xbf16, #tpu.memory_space<vmem>>, %arg7: memref<64x1xf32, #tpu.memory_space<vmem>>, %arg8: memref<32x64xbf16, #tpu.memory_space<vmem>>, %arg9: memref<32x1xf32, #tpu.memory_space<vmem>>, %arg10: memref<8x32xbf16, #tpu.memory_space<vmem>>, %arg11: memref<8x1xf32, #tpu.memory_space<vmem>>, %arg12: memref<8x128xf32, #tpu.memory_space<vmem>>) attributes {dimension_semantics = [#tpu.dimension_semantics<parallel>], iteration_bounds = array<i64: 1>, scalar_prefetch = 0 : i64, scratch_operands = 0 : i64, tpu.core_type = #tpu.core_type<tc>, window_params = [{transform_indices = @transform_0, window_bounds = array<i64: 8, 128>}, {pipeline_mode = #tpu.pipeline_mode<synchronous>, transform_indices = @transform_1, window_bounds = array<i64: 256, 8>}, {pipeline_mode = #tpu.pipeline_mode<synchronous>, transform_indices = @transform_2, window_bounds = array<i64: 256, 1>}, {pipeline_mode = #tpu.pipeline_mode<synchronous>, transform_indices = @transform_3, window_bounds = array<i64: 128, 256>}, {pipeline_mode = #tpu.pipeline_mode<synchronous>, transform_indices = @transform_4, window_bounds = array<i64: 128, 1>}, {pipeline_mode = #tpu.pipeline_mode<synchronous>, transform_indices = @transform_5, window_bounds = array<i64: 64, 128>}, {pipeline_mode = #tpu.pipeline_mode<synchronous>, transform_indices = @transform_6, window_bounds = array<i64: 64, 1>}, {pipeline_mode = #tpu.pipeline_mode<synchronous>, transform_indices = @transform_7, window_bounds = array<i64: 32, 64>}, {pipeline_mode = #tpu.pipeline_mode<synchronous>, transform_indices = @transform_8, window_bounds = array<i64: 32, 1>}, {pipeline_mode = #tpu.pipeline_mode<synchronous>, transform_indices = @transform_9, window_bounds = array<i64: 8, 32>}, {pipeline_mode = #tpu.pipeline_mode<synchronous>, transform_indices = @transform_10, window_bounds = array<i64: 8, 1>}, {transform_indices = @transform_11, window_bounds = array<i64: 8, 128>}]} {
    %c0_i32 = arith.constant 0 : i32
    %c128_i32 = arith.constant 128 : i32
    %0 = arith.muli %c0_i32, %c128_i32 : i32
    %1 = tpu.assume_multiple %0, 128 : i32
    %c0 = arith.constant 0 : index
    %2 = arith.index_cast %1 : i32 to index
    %3 = vector.load %arg1[%c0, %2] : memref<8x128xbf16, #tpu.memory_space<vmem>>, vector<8x128xbf16>
    %c0_0 = arith.constant 0 : index
    %c0_1 = arith.constant 0 : index
    %4 = vector.load %arg2[%c0_0, %c0_1] : memref<256x8xbf16, #tpu.memory_space<vmem>>, vector<256x8xbf16>
    %cst = arith.constant dense<0.000000e+00> : vector<256x128xf32>
    %5 = tpu.matmul %4, %3, %cst {dimension_numbers = #tpu.dot_dimension_numbers<[1], [0], [0], [1], [0, 0, 1, 1], [], []>} : vector<256x8xbf16>, vector<8x128xbf16>, vector<256x128xf32> -> vector<256x128xf32>
    %c0_2 = arith.constant 0 : index
    %c0_3 = arith.constant 0 : index
    %6 = vector.load %arg3[%c0_2, %c0_3] : memref<256x1xf32, #tpu.memory_space<vmem>>, vector<256x1xf32>
    %7 = vector.broadcast %6 : vector<256x1xf32> to vector<256x128xf32>
    %8 = arith.addf %5, %7 : vector<256x128xf32>
    %cst_4 = arith.constant 0.000000e+00 : f32
    %9 = vector.broadcast %cst_4 : f32 to vector<256x128xf32>
    %10 = arith.maximumf %8, %9 : vector<256x128xf32>
    %11 = arith.truncf %10 : vector<256x128xf32> to vector<256x128xbf16>
    %c0_5 = arith.constant 0 : index
    %c0_6 = arith.constant 0 : index
    %12 = vector.load %arg4[%c0_5, %c0_6] : memref<128x256xbf16, #tpu.memory_space<vmem>>, vector<128x256xbf16>
    %cst_7 = arith.constant dense<0.000000e+00> : vector<128x128xf32>
    %13 = tpu.matmul %12, %11, %cst_7 {dimension_numbers = #tpu.dot_dimension_numbers<[1], [0], [0], [1], [0, 0, 1, 1], [], []>} : vector<128x256xbf16>, vector<256x128xbf16>, vector<128x128xf32> -> vector<128x128xf32>
    %c0_8 = arith.constant 0 : index
    %c0_9 = arith.constant 0 : index
    %14 = vector.load %arg5[%c0_8, %c0_9] : memref<128x1xf32, #tpu.memory_space<vmem>>, vector<128x1xf32>
    %15 = vector.broadcast %14 : vector<128x1xf32> to vector<128x128xf32>
    %16 = arith.addf %13, %15 : vector<128x128xf32>
    %cst_10 = arith.constant 0.000000e+00 : f32
    %17 = vector.broadcast %cst_10 : f32 to vector<128x128xf32>
    %18 = arith.maximumf %16, %17 : vector<128x128xf32>
    %19 = arith.truncf %18 : vector<128x128xf32> to vector<128x128xbf16>
    %c0_11 = arith.constant 0 : index
    %c0_12 = arith.constant 0 : index
    %20 = vector.load %arg6[%c0_11, %c0_12] : memref<64x128xbf16, #tpu.memory_space<vmem>>, vector<64x128xbf16>
    %cst_13 = arith.constant dense<0.000000e+00> : vector<64x128xf32>
    %21 = tpu.matmul %20, %19, %cst_13 {dimension_numbers = #tpu.dot_dimension_numbers<[1], [0], [0], [1], [0, 0, 1, 1], [], []>} : vector<64x128xbf16>, vector<128x128xbf16>, vector<64x128xf32> -> vector<64x128xf32>
    %c0_14 = arith.constant 0 : index
    %c0_15 = arith.constant 0 : index
    %22 = vector.load %arg7[%c0_14, %c0_15] : memref<64x1xf32, #tpu.memory_space<vmem>>, vector<64x1xf32>
    %23 = vector.broadcast %22 : vector<64x1xf32> to vector<64x128xf32>
    %24 = arith.addf %21, %23 : vector<64x128xf32>
    %cst_16 = arith.constant 0.000000e+00 : f32
    %25 = vector.broadcast %cst_16 : f32 to vector<64x128xf32>
    %26 = arith.maximumf %24, %25 : vector<64x128xf32>
    %27 = arith.truncf %26 : vector<64x128xf32> to vector<64x128xbf16>
    %c0_17 = arith.constant 0 : index
    %c0_18 = arith.constant 0 : index
    %28 = vector.load %arg8[%c0_17, %c0_18] : memref<32x64xbf16, #tpu.memory_space<vmem>>, vector<32x64xbf16>
    %cst_19 = arith.constant dense<0.000000e+00> : vector<32x128xf32>
    %29 = tpu.matmul %28, %27, %cst_19 {dimension_numbers = #tpu.dot_dimension_numbers<[1], [0], [0], [1], [0, 0, 1, 1], [], []>} : vector<32x64xbf16>, vector<64x128xbf16>, vector<32x128xf32> -> vector<32x128xf32>
    %c0_20 = arith.constant 0 : index
    %c0_21 = arith.constant 0 : index
    %30 = vector.load %arg9[%c0_20, %c0_21] : memref<32x1xf32, #tpu.memory_space<vmem>>, vector<32x1xf32>
    %31 = vector.broadcast %30 : vector<32x1xf32> to vector<32x128xf32>
    %32 = arith.addf %29, %31 : vector<32x128xf32>
    %cst_22 = arith.constant 0.000000e+00 : f32
    %33 = vector.broadcast %cst_22 : f32 to vector<32x128xf32>
    %34 = arith.maximumf %32, %33 : vector<32x128xf32>
    %35 = arith.truncf %34 : vector<32x128xf32> to vector<32x128xbf16>
    %c0_23 = arith.constant 0 : index
    %c0_24 = arith.constant 0 : index
    %36 = vector.load %arg10[%c0_23, %c0_24] : memref<8x32xbf16, #tpu.memory_space<vmem>>, vector<8x32xbf16>
    %cst_25 = arith.constant dense<0.000000e+00> : vector<8x128xf32>
    %37 = tpu.matmul %36, %35, %cst_25 {dimension_numbers = #tpu.dot_dimension_numbers<[1], [0], [0], [1], [0, 0, 1, 1], [], []>} : vector<8x32xbf16>, vector<32x128xbf16>, vector<8x128xf32> -> vector<8x128xf32>
    %c0_26 = arith.constant 0 : index
    %c0_27 = arith.constant 0 : index
    %38 = vector.load %arg11[%c0_26, %c0_27] : memref<8x1xf32, #tpu.memory_space<vmem>>, vector<8x1xf32>
    %39 = vector.broadcast %38 : vector<8x1xf32> to vector<8x128xf32>
    %40 = arith.addf %37, %39 : vector<8x128xf32>
    %c0_28 = arith.constant 0 : index
    %41 = arith.index_cast %1 : i32 to index
    %42 = vector.load %arg12[%c0_28, %41] : memref<8x128xf32, #tpu.memory_space<vmem>>, vector<8x128xf32>
    tpu.vector_store %arg12[%c0_28, %41], %40 {strides = array<i32>} : memref<8x128xf32, #tpu.memory_space<vmem>>, vector<8x128xf32>,
    %c1_i32 = arith.constant 1 : i32
    return
  }
  func.func @transform_0(%arg0: i32) -> (i32, i32) {
    %c0_i32 = arith.constant 0 : i32
    %c0_i32_0 = arith.constant 0 : i32
    return %c0_i32, %arg0 : i32, i32
  }
  func.func @transform_1(%arg0: i32) -> (i32, i32) {
    %c0_i32 = arith.constant 0 : i32
    %c0_i32_0 = arith.constant 0 : i32
    %c0_i32_1 = arith.constant 0 : i32
    return %c0_i32, %c0_i32_0 : i32, i32
  }
  func.func @transform_2(%arg0: i32) -> (i32, i32) {
    %c0_i32 = arith.constant 0 : i32
    %c0_i32_0 = arith.constant 0 : i32
    %c0_i32_1 = arith.constant 0 : i32
    return %c0_i32, %c0_i32_0 : i32, i32
  }
  func.func @transform_3(%arg0: i32) -> (i32, i32) {
    %c0_i32 = arith.constant 0 : i32
    %c0_i32_0 = arith.constant 0 : i32
    %c0_i32_1 = arith.constant 0 : i32
    return %c0_i32, %c0_i32_0 : i32, i32
  }
  func.func @transform_4(%arg0: i32) -> (i32, i32) {
    %c0_i32 = arith.constant 0 : i32
    %c0_i32_0 = arith.constant 0 : i32
    %c0_i32_1 = arith.constant 0 : i32
    return %c0_i32, %c0_i32_0 : i32, i32
  }
  func.func @transform_5(%arg0: i32) -> (i32, i32) {
    %c0_i32 = arith.constant 0 : i32
    %c0_i32_0 = arith.constant 0 : i32
    %c0_i32_1 = arith.constant 0 : i32
    return %c0_i32, %c0_i32_0 : i32, i32
  }
  func.func @transform_6(%arg0: i32) -> (i32, i32) {
    %c0_i32 = arith.constant 0 : i32
    %c0_i32_0 = arith.constant 0 : i32
    %c0_i32_1 = arith.constant 0 : i32
    return %c0_i32, %c0_i32_0 : i32, i32
  }
  func.func @transform_7(%arg0: i32) -> (i32, i32) {
    %c0_i32 = arith.constant 0 : i32
    %c0_i32_0 = arith.constant 0 : i32
    %c0_i32_1 = arith.constant 0 : i32
    return %c0_i32, %c0_i32_0 : i32, i32
  }
  func.func @transform_8(%arg0: i32) -> (i32, i32) {
    %c0_i32 = arith.constant 0 : i32
    %c0_i32_0 = arith.constant 0 : i32
    %c0_i32_1 = arith.constant 0 : i32
    return %c0_i32, %c0_i32_0 : i32, i32
  }
  func.func @transform_9(%arg0: i32) -> (i32, i32) {
    %c0_i32 = arith.constant 0 : i32
    %c0_i32_0 = arith.constant 0 : i32
    %c0_i32_1 = arith.constant 0 : i32
    return %c0_i32, %c0_i32_0 : i32, i32
  }
  func.func @transform_10(%arg0: i32) -> (i32, i32) {
    %c0_i32 = arith.constant 0 : i32
    %c0_i32_0 = arith.constant 0 : i32
    %c0_i32_1 = arith.constant 0 : i32
    return %c0_i32, %c0_i32_0 : i32, i32
  }
  func.func @transform_11(%arg0: i32) -> (i32, i32) {
    %c0_i32 = arith.constant 0 : i32
    %c0_i32_0 = arith.constant 0 : i32
    return %c0_i32, %arg0 : i32, i32
  }
}

</mosaic_0001>

<bundles_post_ra>
// kernel: tpu_custom_call.1
= control target key start
LH: loop header
LB: loop body
LE: loop exit
PB: predicated region body
PF: predicated region fallthrough
CT: control target
= control target key end

     0   :  { %vm394_vm0 = vcmask 1043456   ;;  %v1557_v3 = vmov 0   ;;  %vm345_vm1 = vcmask 64512   ;;  %s2026_s0 = inlined_call_operand.vmem [shape: bf16[8,128], index: 0, kind: input, shape index: {}]   ;;  %s2027_s1 = inlined_call_operand.vmem [shape: bf16[256,8], index: 1, kind: input, shape index: {}]   ;;  %s2028_s2 = inlined_call_operand.vmem [shape: f32[256,1], index: 2, kind: input, shape index: {}]   ;;  %s2029_s3 = inlined_call_operand.vmem [shape: bf16[128,256], index: 3, kind: input, shape index: {}]   ;;  %s2030_s4 = inlined_call_operand.vmem [shape: f32[128,1], index: 4, kind: input, shape index: {}]   ;;  %s2031_s5 = inlined_call_operand.vmem [shape: bf16[64,128], index: 5, kind: input, shape index: {}]   ;;  %s2032_s6 = inlined_call_operand.vmem [shape: f32[64,1], index: 6, kind: input, shape index: {}]   ;;  %s2033_s7 = inlined_call_operand.vmem [shape: bf16[32,64], index: 7, kind: input, shape index: {}]   ;;  %s2034_s8 = inlined_call_operand.vmem [shape: f32[32,1], index: 8, kind: input, shape index: {}]   ;;  %s2035_s9 = inlined_call_operand.vmem [shape: bf16[8,32], index: 9, kind: input, shape index: {}]   ;;  %s2036_s10 = inlined_call_operand.vmem [shape: f32[8,1], index: 10, kind: input, shape index: {}]   ;;  %s2037_s11 = inlined_call_operand.hbm [shape: f32[8,128], index: 11, kind: output, shape index: {}]  }
   0x1   :  { %v40_v0 = vld [vmem:[%s2026_s0] sm:$0xf]  ;;  %1486 = vset.pattern.permute.xlu1 %v1557_v3  ;;  %1485 = vset.pattern.permute.xlu0 %v1557_v3  ;;  %v1488_v6 = vld [vmem:[%s2027_s1 + $0x8] sm:$0xff]   ;;  %v1489_v9 = vld [vmem:[%s2027_s1 + $0x10] sm:$0xff]  }
   0x2   :  { %v89_v1 = vld [vmem:[%s2028_s2 + $0x80] sm:$0xff]  ;;  %v396_v4 = vsel %vm394_vm0, %v40_v0, 0  ;;  %1480 = vmatprep.subr.msk.bf16.mxu0 %vm394_vm0, %v40_v0  ;;  %v90_v7 = vld [vmem:[%s2028_s2 + $0x88] sm:$0xff]  ;;  %v91_v10 = vld [vmem:[%s2028_s2 + $0x90] sm:$0xff] }
   0x3   :  { %v73_v2 = vld [vmem:[%s2028_s2] sm:$0xff]  ;;  %187 = vperm.xlu0 %1485, %v89_v1   ;;  %1403 = vmatpush3.bf16.msra.mxu0 %v396_v4  ;;  %v74_v8 = vld [vmem:[%s2028_s2 + $0x8] sm:$0xff]  ;;  %v92_v11 = vld [vmem:[%s2028_s2 + $0x98] sm:$0xff] }
   0x4   :  { %v1487_v5 = vld [vmem:[%s2027_s1] sm:$0xff]   ;;  %107 = vperm.xlu1 %1486, %v73_v2   ;;  %v1490_v12 = vld [vmem:[%s2027_s1 + $0x18] sm:$0xff]   ;;  %v75_v13 = vld [vmem:[%s2028_s2 + $0x10] sm:$0xff] }
   0x5   :  { %1404 = vmatprep.mubr.msk.bf16.mxu0 %vm345_vm1, %v1487_v5  ;;  %v1491_v14 = vld [vmem:[%s2027_s1 + $0x20] sm:$0xff]   ;;  %v76_v15 = vld [vmem:[%s2028_s2 + $0x18] sm:$0xff]  ;;  %v94_v17 = vld [vmem:[%s2028_s2 + $0xa8] sm:$0xff] }
   0x6   :  { %1405 = vmatmul.mubr.msk.bf16.vlgmr.msra.gmra.mrb[0].mxu0 %vm345_vm1, %v1488_v6  ;;  %v93_v16 = vld [vmem:[%s2028_s2 + $0xa0] sm:$0xff]  ;;  %v1492_v18 = vld [vmem:[%s2027_s1 + $0x28] sm:$0xff]   ;;  %v1493_v20 = vld [vmem:[%s2027_s1 + $0x30] sm:$0xff]  }
   0x7   :  { %192 = vperm.xlu0 %1485, %v90_v7   ;;  %1408 = vmatprep.mubr.msk.bf16.mxu0 %vm345_vm1, %v1489_v9  ;;  %v77_v19 = vld [vmem:[%s2028_s2 + $0x20] sm:$0xff]  ;;  %v78_v21 = vld [vmem:[%s2028_s2 + $0x28] sm:$0xff]  ;;  %v95_v22 = vld [vmem:[%s2028_s2 + $0xb0] sm:$0xff] }
   0x8   :  { %112 = vperm.xlu1 %1486, %v74_v8   ;;  %v96_v23 = vld [vmem:[%s2028_s2 + $0xb8] sm:$0xff]  ;;  %v79_v25 = vld [vmem:[%s2028_s2 + $0x30] sm:$0xff]  ;;  %v1495_v26 = vld [vmem:[%s2027_s1 + $0x40] sm:$0xff]  }
   0x9   :  { %v1494_v24 = vld [vmem:[%s2027_s1 + $0x38] sm:$0xff]   ;;  %v97_v28 = vld [vmem:[%s2028_s2 + $0xc0] sm:$0xff]  ;;  %v98_v29 = vld [vmem:[%s2028_s2 + $0xc8] sm:$0xff] }
   0xa   :  { %v80_v27 = vld [vmem:[%s2028_s2 + $0x38] sm:$0xff]  ;;  %v1496_v30 = vld [vmem:[%s2027_s1 + $0x48] sm:$0xff]   ;;  %v81_v31 = vld [vmem:[%s2028_s2 + $0x40] sm:$0xff] }
   0xb   :  { %197 = vperm.xlu0 %1485, %v91_v10   ;;  %v1497_v32 = vld [vmem:[%s2027_s1 + $0x50] sm:$0xff]   ;;  %v82_v33 = vld [vmem:[%s2028_s2 + $0x48] sm:$0xff]  ;;  %v100_v35 = vld [vmem:[%s2028_s2 + $0xd8] sm:$0xff] }
   0xc   :  { %202 = vperm.xlu1 %1486, %v92_v11   ;;  %v99_v34 = vld [vmem:[%s2028_s2 + $0xd0] sm:$0xff]  ;;  %v1498_v36 = vld [vmem:[%s2027_s1 + $0x58] sm:$0xff]   ;;  %v1499_v38 = vld [vmem:[%s2027_s1 + $0x60] sm:$0xff]  }
   0xd   :  { %v83_v37 = vld [vmem:[%s2028_s2 + $0x50] sm:$0xff]  ;;  %v84_v39 = vld [vmem:[%s2028_s2 + $0x58] sm:$0xff] }
   0xe   :  { %1409 = vmatmul.mubr.msk.bf16.gmra.mrb[4].mxu0 %vm345_vm1, %v1490_v12 }
   0xf   :  { %117 = vperm.xlu0 %1485, %v75_v13   ;;  %1412 = vmatprep.mubr.msk.bf16.mxu0 %vm345_vm1, %v1491_v14 }
  0x10   :  { %122 = vperm.xlu1 %1486, %v76_v15  }
  0x13   :  { %207 = vperm.xlu0 %1485, %v93_v16  }
  0x14   :  { %212 = vperm.xlu1 %1486, %v94_v17  }
  0x16   :  { %1413 = vmatmul.mubr.msk.bf16.gmra.mrb[8].mxu0 %vm345_vm1, %v1492_v18 }
  0x17   :  { %127 = vperm.xlu0 %1485, %v77_v19   ;;  %1416 = vmatprep.mubr.msk.bf16.mxu0 %vm345_vm1, %v1493_v20 }
  0x18   :  { %132 = vperm.xlu1 %1486, %v78_v21  }
  0x1b   :  { %217 = vperm.xlu0 %1485, %v95_v22  }
  0x1c   :  { %222 = vperm.xlu1 %1486, %v96_v23  }
  0x1e   :  { %1417 = vmatmul.mubr.msk.bf16.gmra.mrb[12].mxu0 %vm345_vm1, %v1494_v24 }
  0x1f   :  { %137 = vperm.xlu0 %1485, %v79_v25   ;;  %1420 = vmatprep.mubr.msk.bf16.mxu0 %vm345_vm1, %v1495_v26 }
  0x20   :  { %142 = vperm.xlu1 %1486, %v80_v27  }
  0x23   :  { %227 = vperm.xlu0 %1485, %v97_v28  }
  0x24   :  { %232 = vperm.xlu1 %1486, %v98_v29  }
  0x26   :  { %1421 = vmatmul.mubr.msk.bf16.gmra.mrb[16].mxu0 %vm345_vm1, %v1496_v30 }
  0x27   :  { %147 = vperm.xlu0 %1485, %v81_v31   ;;  %1424 = vmatprep.mubr.msk.bf16.mxu0 %vm345_vm1, %v1497_v32 }
  0x28   :  { %152 = vperm.xlu1 %1486, %v82_v33  }
  0x2b   :  { %237 = vperm.xlu0 %1485, %v99_v34  }
  0x2c   :  { %242 = vperm.xlu1 %1486, %v100_v35  }
  0x2e   :  { %1425 = vmatmul.mubr.msk.bf16.gmra.mrb[20].mxu0 %vm345_vm1, %v1498_v36 }
  0x2f   :  { %157 = vperm.xlu0 %1485, %v83_v37  }
  0x30   :  { %16 = vsyncpa [#allocation3], 0  ;;  %162 = vperm.xlu1 %1486, %v84_v39   ;;  %v101_v40 = vld [vmem:[%s2028_s2 + $0xe0] sm:$0xff]  ;;  %1428 = vmatprep.mubr.msk.bf16.mxu0 %vm345_vm1, %v1499_v38  ;;  %v102_v41 = vld [vmem:[%s2028_s2 + $0xe8] sm:$0xff]  ;;  %vm1115_vm2 = vcmask 523264   ;;  %vm1559_vm3 = vmmov 0  }
  0x31   :  { %v1500_v42 = vld [vmem:[%s2027_s1 + $0x68] sm:$0xff]   ;;  %v85_v43 = vld [vmem:[%s2028_s2 + $0x60] sm:$0xff]  ;;  %v1501_v44 = vld [vmem:[%s2027_s1 + $0x70] sm:$0xff]   ;;  %vm1184_vm4 = vcmask 261120  }
  0x32   :  { %v86_v45 = vld [vmem:[%s2028_s2 + $0x68] sm:$0xff]  ;;  %v103_v46 = vld [vmem:[%s2028_s2 + $0xf0] sm:$0xff]  ;;  %v104_v47 = vld [vmem:[%s2028_s2 + $0xf8] sm:$0xff] }
  0x33   :  { %247 = vperm.xlu0 %1485, %v101_v40   ;;  %v1502_v48 = vld [vmem:[%s2027_s1 + $0x78] sm:$0xff]   ;;  %v87_v49 = vld [vmem:[%s2028_s2 + $0x70] sm:$0xff]  ;;  %v623_v51 = vld [vmem:[%s2030_s4] sm:$0xff]  ;;  %s1560_s1 = smov [#allocation2]  }
  0x34   :  { %252 = vperm.xlu1 %1486, %v102_v41   ;;  %v88_v50 = vld [vmem:[%s2028_s2 + $0x78] sm:$0xff]  ;;  %v624_v52 = vld [vmem:[%s2030_s4 + $0x8] sm:$0xff]  ;;  %v625_v53 = vld [vmem:[%s2030_s4 + $0x10] sm:$0xff]  ;;  %s1235_s19 = sshll.u32 %s1560_s1, 4  ;;  %s1236_s19 = int_to_ptr.vmem [resolvable:$true] %s1235_s19 }
  0x35   :  { %v626_v54 = vld [vmem:[%s2030_s4 + $0x18] sm:$0xff]  ;;  %v627_v55 = vld [vmem:[%s2030_s4 + $0x20] sm:$0xff]  ;;  %v628_v56 = vld [vmem:[%s2030_s4 + $0x28] sm:$0xff]  ;;  %s1533_s20 = scalar_lea.vmem %s1236_s19, 128  ;;  %p1538_p1 = scmp.lt.s32.totalorder %s1236_s19, %s1236_s19 }
  0x36   :  { %1429 = vmatmul.mubr.msk.bf16.gmra.mrb[24].mxu0 %vm345_vm1, %v1500_v42  ;;  %v629_v57 = vld [vmem:[%s2030_s4 + $0x30] sm:$0xff]  ;;  %v630_v58 = vld [vmem:[%s2030_s4 + $0x38] sm:$0xff]  ;;  %v631_v59 = vld [vmem:[%s2030_s4 + $0x40] sm:$0xff]  ;;  %p1534_p0 = scmp.ne.s32.totalorder %s1236_s19, %s1533_s20  ;;  %p1539_p2 = scmp.lt.s32.totalorder %s1533_s20, %s1533_s20 }
  0x37   :  { %167 = vperm.xlu0 %1485, %v85_v43   ;;  %1432 = vmatprep.mubr.msk.bf16.mxu0 %vm345_vm1, %v1501_v44  ;;  %v632_v60 = vld [vmem:[%s2030_s4 + $0x48] sm:$0xff]  ;;  %v633_v61 = vld [vmem:[%s2030_s4 + $0x50] sm:$0xff]  ;;  %v634_v62 = vld [vmem:[%s2030_s4 + $0x58] sm:$0xff] }
  0x38   :  { %172 = vperm.xlu1 %1486, %v86_v45   ;;  %v635_v63 = vld [vmem:[%s2030_s4 + $0x60] sm:$0xff]  ;;  %v636_v0 = vld [vmem:[%s2030_s4 + $0x68] sm:$0xff]  ;;  %v637_v1 = vld [vmem:[%s2030_s4 + $0x70] sm:$0xff]  ;;  %p1540_p3 = por %p1539_p2, %p1538_p1 }
  0x39   :  { %v638_v2 = vld [vmem:[%s2030_s4 + $0x78] sm:$0xff]  ;;  %v928_v3 = vld [vmem:[%s2032_s6] sm:$0xff]  ;;  %v929_v4 = vld [vmem:[%s2032_s6 + $0x8] sm:$0xff] }
  0x3a   :  { %v930_v5 = vld [vmem:[%s2032_s6 + $0x10] sm:$0xff]  ;;  %v931_v6 = vld [vmem:[%s2032_s6 + $0x18] sm:$0xff]  ;;  %v932_v7 = vld [vmem:[%s2032_s6 + $0x20] sm:$0xff]  ;;  %p1541_p4 = pnand %p1540_p3, %p1534_p0 }
  0x3b   :  { %257 = vperm.xlu0 %1485, %v103_v46   ;;  %v933_v8 = vld [vmem:[%s2032_s6 + $0x28] sm:$0xff]  ;;  %v934_v9 = vld [vmem:[%s2032_s6 + $0x30] sm:$0xff]  ;;  %v935_v10 = vld [vmem:[%s2032_s6 + $0x38] sm:$0xff] }
  0x3c   :  { %262 = vperm.xlu1 %1486, %v104_v47   ;;  %v1081_v11 = vld [vmem:[%s2034_s8] sm:$0xff]  ;;  %v1082_v12 = vld [vmem:[%s2034_s8 + $0x8] sm:$0xff]  ;;  %v1083_v13 = vld [vmem:[%s2034_s8 + $0x10] sm:$0xff] }
  0x3d   :  { %v1084_v14 = vld [vmem:[%s2034_s8 + $0x18] sm:$0xff]  ;;  %v1178_v15 = vld [vmem:[%s2036_s10] sm:$0xff] }
  0x3e   :  { %1433 = vmatmul.mubr.msk.bf16.gmra.mrb[28].mxu0 %vm345_vm1, %v1502_v48  ;;  %v1505_v20 = vld [vmem:[%s2029_s3 + $0x4] ss:$8 sps:$4 sm:$0xff]  }
  0x3f   :  { %177 = vperm.xlu0 %1485, %v87_v49   ;;  %831 = vmatprep.mubr.bf16.mxu1 %v1505_v20 }
  0x40   :  { %182 = vperm.xlu1 %1486, %v88_v50  }
  0x43   :  { %641 = vperm.xlu0 %1485, %v623_v51  }
  0x44   :  { %646 = vperm.xlu1 %1486, %v624_v52  }
  0x47   :  { %651 = vperm.xlu0 %1485, %v625_v53  }
  0x48   :  { %656 = vperm.xlu1 %1486, %v626_v54  }
  0x4b   :  { %661 = vperm.xlu0 %1485, %v627_v55  }
  0x4c   :  { %666 = vperm.xlu1 %1486, %v628_v56  }
  0x4f   :  { %671 = vperm.xlu0 %1485, %v629_v57  }
  0x50   :  { %676 = vperm.xlu1 %1486, %v630_v58  }
  0x53   :  { %681 = vperm.xlu0 %1485, %v631_v59  }
  0x54   :  { %686 = vperm.xlu1 %1486, %v632_v60  }
  0x57   :  { %691 = vperm.xlu0 %1485, %v633_v61  }
  0x58   :  { %696 = vperm.xlu1 %1486, %v634_v62  }
  0x5b   :  { %701 = vperm.xlu0 %1485, %v635_v63  }
  0x5c   :  { %706 = vperm.xlu1 %1486, %v636_v0  }
  0x5f   :  { %711 = vperm.xlu0 %1485, %v637_v1  }
  0x60   :  { %716 = vperm.xlu1 %1486, %v638_v2  }
  0x63   :  { %938 = vperm.xlu0 %1485, %v928_v3  }
  0x64   :  { %943 = vperm.xlu1 %1486, %v929_v4  }
  0x67   :  { %948 = vperm.xlu0 %1485, %v930_v5  }
  0x68   :  { %953 = vperm.xlu1 %1486, %v931_v6  }
  0x6b   :  { %958 = vperm.xlu0 %1485, %v932_v7  }
  0x6c   :  { %963 = vperm.xlu1 %1486, %v933_v8  }
  0x6f   :  { %968 = vperm.xlu0 %1485, %v934_v9  }
  0x70   :  { %973 = vperm.xlu1 %1486, %v935_v10  }
  0x73   :  { %1087 = vperm.xlu0 %1485, %v1081_v11  }
  0x74   :  { %1092 = vperm.xlu1 %1486, %v1082_v12  }
  0x77   :  { %1097 = vperm.xlu0 %1485, %v1083_v13  }
  0x78   :  { %1102 = vperm.xlu1 %1486, %v1084_v14  }
  0x7b   :  { %1181 = vperm.xlu0 %1485, %v1178_v15  }
  0x82   :  { %v1871_v16 = vpop.permute.xlu0 %187 }
  0x83   :  { %v108_v17 = vpop.permute.xlu1 %107 }
  0x86   :  { %v1873_v18 = vpop.permute.xlu0 %192 }
  0x87   :  { %v113_v19 = vpop.permute.xlu1 %112 }
  0x8a   :  { %v1878_v21 = vpop.permute.xlu0 %197 }
  0x8b   :  { %v1880_v22 = vpop.permute.xlu1 %202 }
  0x8e   :  { %v118_v23 = vpop.permute.xlu0 %117 }
  0x8f   :  { %v123_v24 = vpop.permute.xlu1 %122 }
  0x92   :  { %v1882_v25 = vpop.permute.xlu0 %207 }
  0x93   :  { %v1884_v26 = vpop.permute.xlu1 %212 }
  0x96   :  { %v128_v27 = vpop.permute.xlu0 %127 }
  0x97   :  { %v133_v28 = vpop.permute.xlu1 %132 }
  0x9a   :  { %v1886_v29 = vpop.permute.xlu0 %217 }
  0x9b   :  { %v1888_v30 = vpop.permute.xlu1 %222 }
  0x9e   :  { %v138_v31 = vpop.permute.xlu0 %137 }
  0x9f   :  { %v143_v32 = vpop.permute.xlu1 %142 }
  0xa2   :  { %v1890_v33 = vpop.permute.xlu0 %227 }
  0xa3   :  { %v1892_v34 = vpop.permute.xlu1 %232 }
  0xa6   :  { %v148_v35 = vpop.permute.xlu0 %147 }
  0xa7   :  { %v153_v36 = vpop.permute.xlu1 %152 }
  0xaa   :  { %v1894_v37 = vpop.permute.xlu0 %237 }
  0xab   :  { %v1896_v38 = vpop.permute.xlu1 %242 }
  0xae   :  { %v158_v39 = vpop.permute.xlu0 %157 }
  0xaf   :  { %v163_v43 = vpop.permute.xlu1 %162 }
  0xb2   :  { %v1898_v51 = vpop.permute.xlu0 %247 }
  0xb3   :  { %v1902_v55 = vpop.permute.xlu1 %252 }
  0xb6   :  { %v168_v0 = vpop.permute.xlu0 %167 }
  0xb7   :  { %v173_v4 = vpop.permute.xlu1 %172 }
  0xba   :  { %v1910_v12 = vpop.permute.xlu0 %257 }
  0xd9   :  { %v1406_v40 = vpop.f32.mrb[0].mxu0 }
  0xda   :  { %v441_v41 = vadd.f32 %v1406_v40, %v118_v23  ;;  %v432_v42 = vpop.f32.mrb[1].mxu0 }
  0xdb   :  { %v433_v44 = vadd.f32 %v432_v42, %v108_v17  ;;  %v1407_v45 = vpop.f32.mrb[2].mxu0 }
  0xdc   :  { %v444_v46 = vadd.f32 %v1407_v45, %v123_v24  ;;  %v435_v47 = vpop.f32.mrb[3].mxu0  ;;  %v561_v49 = vmax.f32 %v441_v41, 0.0 }
  0xdd   :  { %v436_v48 = vadd.f32 %v435_v47, %v113_v19  ;;  %v559_v52 = vmax.f32 %v433_v44, 0.0  ;;  %v1912_v19 = vpop.permute.xlu1 %262 }
  0xde   :  { %v562_v50 = vmax.f32 %v444_v46, 0.0 }
  0xdf   :  { %v560_v53 = vmax.f32 %v436_v48, 0.0 }
  0xe0   :  { %v1900_v54 = vpack.c.bf16 %v562_v50, %v561_v49 }
  0xe1   :  { %v1410_v56 = vpop.f32.mrb[4].mxu0  ;;  %v1904_v57 = vpack.c.bf16 %v560_v53, %v559_v52  ;;  %v183_v44 = vpop.permute.xlu1 %182 }
  0xe2   :  { %v457_v58 = vadd.f32 %v1410_v56, %v138_v31  ;;  %v448_v59 = vpop.f32.mrb[5].mxu0 }
  0xe3   :  { %v449_v60 = vadd.f32 %v448_v59, %v128_v27  ;;  %v1411_v61 = vpop.f32.mrb[6].mxu0 }
  0xe4   :  { %v460_v62 = vadd.f32 %v1411_v61, %v143_v32  ;;  %v451_v63 = vpop.f32.mrb[7].mxu0  ;;  %v565_v2 = vmax.f32 %v457_v58, 0.0  ;;  %v178_v32 = vpop.permute.xlu0 %177 }
  0xe5   :  { %v452_v1 = vadd.f32 %v451_v63, %v133_v28  ;;  %v563_v5 = vmax.f32 %v449_v60, 0.0 }
  0xe6   :  { %v566_v3 = vmax.f32 %v460_v62, 0.0 }
  0xe7   :  { %v564_v6 = vmax.f32 %v452_v1, 0.0 }
  0xe8   :  { %v1906_v7 = vpack.c.bf16 %v566_v3, %v565_v2 }
  0xe9   :  { %v1908_v8 = vpack.c.bf16 %v564_v6, %v563_v5  ;;  %v1414_v9 = vpop.f32.mrb[8].mxu0 }
  0xea   :  { %v473_v10 = vadd.f32 %v1414_v9, %v158_v39  ;;  %v464_v11 = vpop.f32.mrb[9].mxu0 }
  0xeb   :  { %v465_v13 = vadd.f32 %v464_v11, %v148_v35  ;;  %v1415_v14 = vpop.f32.mrb[10].mxu0 }
  0xec   :  { %v476_v15 = vadd.f32 %v1415_v14, %v163_v43  ;;  %v467_v17 = vpop.f32.mrb[11].mxu0  ;;  %v569_v23 = vmax.f32 %v473_v10, 0.0 }
  0xed   :  { %v468_v20 = vadd.f32 %v467_v17, %v153_v36  ;;  %v567_v27 = vmax.f32 %v465_v13, 0.0 }
  0xee   :  { %v570_v24 = vmax.f32 %v476_v15, 0.0 }
  0xef   :  { %v568_v28 = vmax.f32 %v468_v20, 0.0 }
  0xf0   :  { %v1914_v31 = vpack.c.bf16 %v570_v24, %v569_v23 }
  0xf1   :  { %v1916_v40 = vpack.c.bf16 %v568_v28, %v567_v27  ;;  %v1418_v39 = vpop.f32.mrb[12].mxu0 }
  0xf2   :  { %v489_v41 = vadd.f32 %v1418_v39, %v178_v32  ;;  %v480_v42 = vpop.f32.mrb[13].mxu0 }
  0xf3   :  { %v481_v35 = vadd.f32 %v480_v42, %v168_v0  ;;  %v1419_v45 = vpop.f32.mrb[14].mxu0 }
  0xf4   :  { %v492_v43 = vadd.f32 %v1419_v45, %v183_v44  ;;  %v483_v46 = vpop.f32.mrb[15].mxu0  ;;  %v573_v48 = vmax.f32 %v489_v41, 0.0 }
  0xf5   :  { %v484_v47 = vadd.f32 %v483_v46, %v173_v4  ;;  %v571_v49 = vmax.f32 %v481_v35, 0.0 }
  0xf6   :  { %v574_v36 = vmax.f32 %v492_v43, 0.0 }
  0xf7   :  { %v572_v50 = vmax.f32 %v484_v47, 0.0 }
  0xf8   :  { %v1918_v52 = vpack.c.bf16 %v574_v36, %v573_v48 }
  0xf9   :  { %v1920_v53 = vpack.c.bf16 %v572_v50, %v571_v49  ;;  %v1422_v56 = vpop.f32.mrb[16].mxu0  ;;  %v1512_v50 = vld [vmem:[%s2029_s3 + $0x34] ss:$8 sps:$4 sm:$0xff]  }
  0xfa   :  { %v505_v58 = vadd.f32 %v1422_v56, %v1878_v21  ;;  %v496_v59 = vpop.f32.mrb[17].mxu0  ;;  %v1517_v56 = vld [vmem:[%s2029_s3 + $0x40] ss:$8 sps:$4 sm:$0xff]  }
  0xfb   :  { %v497_v60 = vadd.f32 %v496_v59, %v1871_v16  ;;  %v1423_v61 = vpop.f32.mrb[18].mxu0  ;;  %v1520_v59 = vld [vmem:[%s2029_s3 + $0x50] ss:$8 sps:$4 sm:$0xff]  }
  0xfc   :  { %v508_v62 = vadd.f32 %v1423_v61, %v1880_v22  ;;  %v499_v63 = vpop.f32.mrb[19].mxu0  ;;  %v577_v1 = vmax.f32 %v505_v58, 0.0  ;;  %v1518_v58 = vld [vmem:[%s2029_s3 + $0x54] ss:$8 sps:$4 sm:$0xff]   ;;  %v1523_v61 = vld [vmem:[%s2029_s3 + $0x60] ss:$8 sps:$4 sm:$0xff]  }
  0xfd   :  { %v500_v0 = vadd.f32 %v499_v63, %v1873_v18  ;;  %v575_v3 = vmax.f32 %v497_v60, 0.0  ;;  %v1521_v60 = vld [vmem:[%s2029_s3 + $0x64] ss:$8 sps:$4 sm:$0xff]   ;;  %v1526_v63 = vld [vmem:[%s2029_s3 + $0x70] ss:$8 sps:$4 sm:$0xff]  }
  0xfe   :  { %v578_v2 = vmax.f32 %v508_v62, 0.0  ;;  %v1524_v62 = vld [vmem:[%s2029_s3 + $0x74] ss:$8 sps:$4 sm:$0xff]  }
  0xff   :  { %v576_v4 = vmax.f32 %v500_v0, 0.0  ;;  %v1527_v0 = vld [vmem:[%s2031_s5] sm:$0xff]  }
 0x100   :  { %v600_v5 = vpack.c.bf16 %v578_v2, %v577_v1  ;;  %1452 = vmatprep.mubr.bf16.mxu0 %v1527_v0 }
 0x101   :  { %v1426_v6 = vpop.f32.mrb[20].mxu0  ;;  %v599_v9 = vpack.c.bf16 %v576_v4, %v575_v3 }
 0x102   :  { %v521_v10 = vadd.f32 %v1426_v6, %v1886_v29  ;;  %v512_v11 = vpop.f32.mrb[21].mxu0 }
 0x103   :  { %v513_v21 = vadd.f32 %v512_v11, %v1882_v25  ;;  %v1427_v13 = vpop.f32.mrb[22].mxu0  ;;  %1317 = vmatprep.subr.bf16.mxu1 %v599_v9  ;;  %v647_v11 = vpop.permute.xlu1 %646 }
 0x104   :  { %v524_v16 = vadd.f32 %v1427_v13, %v1888_v30  ;;  %v515_v22 = vpop.f32.mrb[23].mxu0  ;;  %1318 = vmatpush3.bf16.msra.mxu1 %v1904_v57  ;;  %v581_v14 = vmax.f32 %v521_v10, 0.0 }
 0x105   :  { %v516_v18 = vadd.f32 %v515_v22, %v1884_v26  ;;  %1319 = vmatprep.subr.bf16.mxu1 %v600_v5  ;;  %v579_v17 = vmax.f32 %v513_v21, 0.0  ;;  %v642_v5 = vpop.permute.xlu0 %641 }
 0x106   :  { %v582_v15 = vmax.f32 %v524_v16, 0.0 }
 0x107   :  { %v580_v20 = vmax.f32 %v516_v18, 0.0 }
 0x108   :  { %v602_v23 = vpack.c.bf16 %v582_v15, %v581_v14  ;;  %1320 = vmatpush3.bf16.msra.mxu1 %v1900_v54 }
 0x109   :  { %v601_v29 = vpack.c.bf16 %v580_v20, %v579_v17  ;;  %v1430_v24 = vpop.f32.mrb[24].mxu0  ;;  %v652_v20 = vpop.permute.xlu0 %651 }
 0x10a   :  { %v537_v25 = vadd.f32 %v1430_v24, %v1894_v37  ;;  %v528_v27 = vpop.f32.mrb[25].mxu0 }
 0x10b   :  { %v529_v30 = vadd.f32 %v528_v27, %v1890_v33  ;;  %v1431_v28 = vpop.f32.mrb[26].mxu0  ;;  %1321 = vmatprep.subr.bf16.mxu1 %v601_v29 }
 0x10c   :  { %v540_v57 = vadd.f32 %v1431_v28, %v1896_v38  ;;  %v531_v26 = vpop.f32.mrb[27].mxu0  ;;  %1322 = vmatpush3.bf16.msra.mxu1 %v1908_v8  ;;  %v585_v39 = vmax.f32 %v537_v25, 0.0  ;;  %v657_v25 = vpop.permute.xlu1 %656 }
 0x10d   :  { %v532_v32 = vadd.f32 %v531_v26, %v1892_v34  ;;  %1323 = vmatprep.subr.bf16.mxu1 %v602_v23  ;;  %v583_v54 = vmax.f32 %v529_v30, 0.0 }
 0x10e   :  { %v586_v41 = vmax.f32 %v540_v57, 0.0 }
 0x10f   :  { %v584_v42 = vmax.f32 %v532_v32, 0.0 }
 0x110   :  { %v604_v44 = vpack.c.bf16 %v586_v41, %v585_v39  ;;  %1324 = vmatpush3.bf16.msra.mxu1 %v1906_v7 }
 0x111   :  { %v603_v37 = vpack.c.bf16 %v584_v42, %v583_v54  ;;  %v1434_v35 = vpop.f32.mrb[28].mxu0  ;;  %v662_v54 = vpop.permute.xlu0 %661 }
 0x112   :  { %v553_v33 = vadd.f32 %v1434_v35, %v1910_v12  ;;  %v544_v45 = vpop.f32.mrb[29].mxu0  ;;  %v667_v35 = vpop.permute.xlu1 %666 }
 0x113   :  { %v545_v38 = vadd.f32 %v544_v45, %v1898_v51  ;;  %v1435_v43 = vpop.f32.mrb[30].mxu0  ;;  %1325 = vmatprep.subr.bf16.mxu1 %v603_v37  ;;  %v1503_v51 = vld [vmem:[%s2029_s3] ss:$8 sps:$4 sm:$0xff]  }
 0x114   :  { %v556_v8 = vadd.f32 %v1435_v43, %v1912_v19  ;;  %v547_v34 = vpop.f32.mrb[31].mxu0  ;;  %1326 = vmatpush3.bf16.msra.mxu1 %v1916_v40  ;;  %v589_v47 = vmax.f32 %v553_v33, 0.0  ;;  %v1508_v19 = vld [vmem:[%s2029_s3 + $0x10] ss:$8 sps:$4 sm:$0xff]   ;;  %v1511_v40 = vld [vmem:[%s2029_s3 + $0x20] ss:$8 sps:$4 sm:$0xff]  }
 0x115   :  { %v548_v46 = vadd.f32 %v547_v34, %v1902_v55  ;;  %1327 = vmatprep.subr.bf16.mxu1 %v604_v44  ;;  %v587_v7 = vmax.f32 %v545_v38, 0.0  ;;  %v1506_v55 = vld [vmem:[%s2029_s3 + $0x14] ss:$8 sps:$4 sm:$0xff]  }
 0x116   :  { %v590_v48 = vmax.f32 %v556_v8, 0.0 }
 0x117   :  { %v588_v36 = vmax.f32 %v548_v46, 0.0 }
 0x118   :  { %v606_v49 = vpack.c.bf16 %v590_v48, %v589_v47  ;;  %1328 = vmatpush3.bf16.msra.mxu1 %v1914_v31  ;;  %v1509_v31 = vld [vmem:[%s2029_s3 + $0x24] ss:$8 sps:$4 sm:$0xff]   ;;  %v672_v48 = vpop.permute.xlu0 %671 }
 0x119   :  { %v605_v12 = vpack.c.bf16 %v588_v36, %v587_v7 }
 0x11b   :  { %1329 = vmatprep.subr.bf16.mxu1 %v605_v12  ;;  %v677_v12 = vpop.permute.xlu1 %676 }
 0x11c   :  { %1330 = vmatpush3.bf16.msra.mxu1 %v1920_v53  ;;  %v1515_v53 = vld [vmem:[%s2029_s3 + $0x44] ss:$8 sps:$4 sm:$0xff]  }
 0x11d   :  { %1331 = vmatprep.subr.bf16.mxu1 %v606_v49 }
 0x120   :  { %1332 = vmatpush3.bf16.msra.mxu1 %v1918_v52  ;;  %v1514_v52 = vld [vmem:[%s2029_s3 + $0x30] ss:$8 sps:$4 sm:$0xff]  }
 0x123   :  { %832 = vmatmul.mubr.bf16.vlgmr.msra.gmra.mrb[0].mxu1 %v1503_v51 }
 0x124   :  { %839 = vmatprep.mubr.bf16.mxu1 %v1506_v55 }
 0x12b   :  { %840 = vmatmul.mubr.bf16.gmra.mrb[4].mxu1 %v1508_v19 }
 0x12c   :  { %847 = vmatprep.mubr.bf16.mxu1 %v1509_v31 }
 0x133   :  { %848 = vmatmul.mubr.bf16.gmra.mrb[8].mxu1 %v1511_v40 }
 0x134   :  { %855 = vmatprep.mubr.bf16.mxu1 %v1512_v50 }
 0x13b   :  { %856 = vmatmul.mubr.bf16.gmra.mrb[12].mxu1 %v1514_v52 }
 0x13c   :  { %863 = vmatprep.mubr.bf16.mxu1 %v1515_v53 }
 0x143   :  { %864 = vmatmul.mubr.bf16.gmra.mrb[16].mxu1 %v1517_v56  ;;  %v682_v56 = vpop.permute.xlu0 %681 }
 0x144   :  { %871 = vmatprep.mubr.bf16.mxu1 %v1518_v58 }
 0x14b   :  { %872 = vmatmul.mubr.bf16.gmra.mrb[20].mxu1 %v1520_v59 }
 0x14c   :  { %879 = vmatprep.mubr.bf16.mxu1 %v1521_v60 }
 0x153   :  { %880 = vmatmul.mubr.bf16.gmra.mrb[24].mxu1 %v1523_v61  ;;  %v687_v61 = vpop.permute.xlu1 %686 }
 0x154   :  { %887 = vmatprep.mubr.bf16.mxu1 %v1524_v62 }
 0x15b   :  { %888 = vmatmul.mubr.bf16.gmra.mrb[28].mxu1 %v1526_v63 }
 0x1f6   :  { %v1333_v1 = vpop.f32.mrb[0].mxu1 }
 0x1f7   :  { %v1334_v2 = vpop.f32.mrb[1].mxu1 }
 0x1f8   :  { %v1335_v3 = vadd.f32 %v1334_v2, %v1333_v1  ;;  %v1336_v4 = vpop.f32.mrb[2].mxu1 }
 0x1f9   :  { %v1337_v6 = vpop.f32.mrb[3].mxu1 }
 0x1fa   :  { %v834_v9 = vadd.f32 %v1335_v3, %v642_v5  ;;  %v1338_v10 = vadd.f32 %v1337_v6, %v1336_v4  ;;  %v692_v6 = vpop.permute.xlu0 %691 }
 0x1fc   :  { %v837_v21 = vadd.f32 %v1338_v10, %v647_v11  ;;  %v896_v13 = vmax.f32 %v834_v9, 0.0 }
 0x1fe   :  { %v897_v16 = vmax.f32 %v837_v21, 0.0  ;;  %v1339_v22 = vpop.f32.mrb[4].mxu1  ;;  %v697_v21 = vpop.permute.xlu1 %696 }
 0x1ff   :  { %v1340_v18 = vpop.f32.mrb[5].mxu1 }
 0x200   :  { %v1341_v14 = vadd.f32 %v1340_v18, %v1339_v22  ;;  %v1342_v15 = vpop.f32.mrb[6].mxu1  ;;  %v912_v17 = vpack.c.bf16 %v897_v16, %v896_v13 }
 0x201   :  { %v1343_v23 = vpop.f32.mrb[7].mxu1 }
 0x202   :  { %v842_v29 = vadd.f32 %v1341_v14, %v652_v20  ;;  %v1344_v24 = vadd.f32 %v1343_v23, %v1342_v15  ;;  %1436 = vmatprep.subr.bf16.mxu0 %v912_v17  ;;  %v702_v23 = vpop.permute.xlu0 %701 }
 0x203   :  { %1437 = vmatpush3.bf16.msra.mxu0 %v912_v17 }
 0x204   :  { %v845_v27 = vadd.f32 %v1344_v24, %v657_v25  ;;  %v898_v30 = vmax.f32 %v842_v29, 0.0 }
 0x206   :  { %v899_v28 = vmax.f32 %v845_v27, 0.0  ;;  %v1345_v57 = vpop.f32.mrb[8].mxu1  ;;  %v707_v27 = vpop.permute.xlu1 %706 }
 0x207   :  { %v1346_v26 = vpop.f32.mrb[9].mxu1 }
 0x208   :  { %v1347_v32 = vadd.f32 %v1346_v26, %v1345_v57  ;;  %v1348_v39 = vpop.f32.mrb[10].mxu1  ;;  %v913_v41 = vpack.c.bf16 %v899_v28, %v898_v30 }
 0x209   :  { %v1349_v42 = vpop.f32.mrb[11].mxu1 }
 0x20a   :  { %v850_v44 = vadd.f32 %v1347_v32, %v662_v54  ;;  %v1350_v37 = vadd.f32 %v1349_v42, %v1348_v39  ;;  %1438 = vmatprep.subr.bf16.mxu0 %v913_v41  ;;  %v712_v42 = vpop.permute.xlu0 %711 }
 0x20b   :  { %1439 = vmatpush3.bf16.msra.mxu0 %v913_v41 }
 0x20c   :  { %v853_v33 = vadd.f32 %v1350_v37, %v667_v35  ;;  %v900_v45 = vmax.f32 %v850_v44, 0.0 }
 0x20e   :  { %v901_v38 = vmax.f32 %v853_v33, 0.0  ;;  %v1351_v43 = vpop.f32.mrb[12].mxu1  ;;  %v717_v33 = vpop.permute.xlu1 %716 }
 0x20f   :  { %v1352_v8 = vpop.f32.mrb[13].mxu1 }
 0x210   :  { %v1353_v34 = vadd.f32 %v1352_v8, %v1351_v43  ;;  %v1354_v46 = vpop.f32.mrb[14].mxu1  ;;  %v914_v47 = vpack.c.bf16 %v901_v38, %v900_v45 }
 0x211   :  { %v1355_v7 = vpop.f32.mrb[15].mxu1 }
 0x212   :  { %v858_v36 = vadd.f32 %v1353_v34, %v672_v48  ;;  %v1356_v49 = vadd.f32 %v1355_v7, %v1354_v46  ;;  %1440 = vmatprep.subr.bf16.mxu0 %v914_v47  ;;  %v1528_v34 = vld [vmem:[%s2031_s5 + $0x8] sm:$0xff]   ;;  %v1529_v46 = vld [vmem:[%s2031_s5 + $0x10] sm:$0xff]   ;;  %v1531_v48 = vld [vmem:[%s2033_s7] sm:$0xff]   ;;  %v939_v7 = vpop.permute.xlu0 %938 }
 0x213   :  { %1441 = vmatpush3.bf16.msra.mxu0 %v914_v47  ;;  %v1530_v47 = vld [vmem:[%s2031_s5 + $0x18] sm:$0xff]  }
 0x214   :  { %v861_v51 = vadd.f32 %v1356_v49, %v677_v12  ;;  %v902_v55 = vmax.f32 %v858_v36, 0.0  ;;  %v944_v36 = vpop.permute.xlu1 %943 }
 0x216   :  { %v903_v19 = vmax.f32 %v861_v51, 0.0  ;;  %v1357_v31 = vpop.f32.mrb[16].mxu1  ;;  %v949_v49 = vpop.permute.xlu0 %948 }
 0x217   :  { %v1358_v40 = vpop.f32.mrb[17].mxu1 }
 0x218   :  { %v1359_v50 = vadd.f32 %v1358_v40, %v1357_v31  ;;  %v1360_v52 = vpop.f32.mrb[18].mxu1  ;;  %v915_v53 = vpack.c.bf16 %v903_v19, %v902_v55  ;;  %v954_v12 = vpop.permute.xlu1 %953 }
 0x219   :  { %v1361_v58 = vpop.f32.mrb[19].mxu1 }
 0x21a   :  { %v866_v59 = vadd.f32 %v1359_v50, %v682_v56  ;;  %v1362_v60 = vadd.f32 %v1361_v58, %v1360_v52  ;;  %1442 = vmatprep.subr.bf16.mxu0 %v915_v53  ;;  %v959_v31 = vpop.permute.xlu0 %958 }
 0x21b   :  { %1443 = vmatpush3.bf16.msra.mxu0 %v915_v53 }
 0x21c   :  { %v869_v62 = vadd.f32 %v1362_v60, %v687_v61  ;;  %v904_v63 = vmax.f32 %v866_v59, 0.0  ;;  %v964_v56 = vpop.permute.xlu1 %963 }
 0x21e   :  { %v905_v0 = vmax.f32 %v869_v62, 0.0  ;;  %v1363_v1 = vpop.f32.mrb[20].mxu1 }
 0x21f   :  { %v1364_v2 = vpop.f32.mrb[21].mxu1 }
 0x220   :  { %v1365_v3 = vadd.f32 %v1364_v2, %v1363_v1  ;;  %v1366_v4 = vpop.f32.mrb[22].mxu1  ;;  %v916_v5 = vpack.c.bf16 %v905_v0, %v904_v63  ;;  %v969_v0 = vpop.permute.xlu0 %968 }
 0x221   :  { %v1367_v9 = vpop.f32.mrb[23].mxu1 }
 0x222   :  { %v874_v10 = vadd.f32 %v1365_v3, %v692_v6  ;;  %v1368_v11 = vadd.f32 %v1367_v9, %v1366_v4  ;;  %1444 = vmatprep.subr.bf16.mxu0 %v916_v5 }
 0x223   :  { %1445 = vmatpush3.bf16.msra.mxu0 %v916_v5  ;;  %v974_v5 = vpop.permute.xlu1 %973 }
 0x224   :  { %v877_v13 = vadd.f32 %v1368_v11, %v697_v21  ;;  %v906_v16 = vmax.f32 %v874_v10, 0.0 }
 0x226   :  { %v907_v22 = vmax.f32 %v877_v13, 0.0  ;;  %v1369_v18 = vpop.f32.mrb[24].mxu1 }
 0x227   :  { %v1370_v14 = vpop.f32.mrb[25].mxu1 }
 0x228   :  { %v1371_v15 = vadd.f32 %v1370_v14, %v1369_v18  ;;  %v1372_v17 = vpop.f32.mrb[26].mxu1  ;;  %v917_v20 = vpack.c.bf16 %v907_v22, %v906_v16 }
 0x229   :  { %v1373_v29 = vpop.f32.mrb[27].mxu1 }
 0x22a   :  { %v882_v24 = vadd.f32 %v1371_v15, %v702_v23  ;;  %v1374_v25 = vadd.f32 %v1373_v29, %v1372_v17  ;;  %1446 = vmatprep.subr.bf16.mxu0 %v917_v20  ;;  %v1532_v17 = vld [vmem:[%s2033_s7 + $0x8] sm:$0xff]   ;;  %v1088_v23 = vpop.permute.xlu0 %1087  ;;  %v1093_v29 = vpop.permute.xlu1 %1092 }
 0x22b   :  { %1447 = vmatpush3.bf16.msra.mxu0 %v917_v20  ;;  %v1558_v20 = vmov 0.0  }
 0x22c   :  { %v885_v30 = vadd.f32 %v1374_v25, %v707_v27  ;;  %v908_v28 = vmax.f32 %v882_v24, 0.0 }
 0x22e   :  { %v909_v57 = vmax.f32 %v885_v30, 0.0  ;;  %v1375_v26 = vpop.f32.mrb[28].mxu1  ;;  %v1098_v24 = vpop.permute.xlu0 %1097 }
 0x22f   :  { %v1376_v32 = vpop.f32.mrb[29].mxu1 }
 0x230   :  { %v1377_v39 = vadd.f32 %v1376_v32, %v1375_v26  ;;  %v1378_v41 = vpop.f32.mrb[30].mxu1  ;;  %v918_v54 = vpack.c.bf16 %v909_v57, %v908_v28  ;;  %v1103_v28 = vpop.permute.xlu1 %1102 }
 0x231   :  { %v1379_v44 = vpop.f32.mrb[31].mxu1 }
 0x232   :  { %v890_v37 = vadd.f32 %v1377_v39, %v712_v42  ;;  %v1380_v35 = vadd.f32 %v1379_v44, %v1378_v41  ;;  %1448 = vmatprep.subr.bf16.mxu0 %v918_v54 }
 0x233   :  { %1449 = vmatpush3.bf16.msra.mxu0 %v918_v54 }
 0x234   :  { %v893_v45 = vadd.f32 %v1380_v35, %v717_v33  ;;  %v910_v38 = vmax.f32 %v890_v37, 0.0 }
 0x236   :  { %v911_v43 = vmax.f32 %v893_v45, 0.0  ;;  %v1177_v45 = vld [vmem:[%s2035_s9] sm:$0xf] }
 0x238   :  { %v919_v8 = vpack.c.bf16 %v911_v43, %v910_v38  ;;  %v1182_v38 = vpop.permute.xlu0 %1181 }
 0x23a   :  { %1450 = vmatprep.subr.bf16.mxu0 %v919_v8 }
 0x23b   :  { %1451 = vmatpush3.bf16.msra.mxu0 %v919_v8 }
 0x23e   :  { %1453 = vmatmul.mubr.bf16.vlgmr.msra.gmra.mrb[32].mxu0 %v1528_v34 }
 0x23f   :  { %1456 = vmatprep.mubr.bf16.mxu0 %v1529_v46 }
 0x246   :  { %1457 = vmatmul.mubr.bf16.gmra.mrb[36].mxu0 %v1530_v47 }
 0x247   :  { %1468 = vmatprep.mubr.msk.bf16.mxu0 %vm1115_vm2, %v1531_v48 }
 0x311   :  { %v1454_v51 = vpop.f32.mrb[32].mxu0 }
 0x312   :  { %v1043_v55 = vadd.f32 %v1454_v51, %v949_v49  ;;  %v1034_v19 = vpop.f32.mrb[33].mxu0 }
 0x313   :  { %v1035_v40 = vadd.f32 %v1034_v19, %v939_v7  ;;  %v1455_v50 = vpop.f32.mrb[34].mxu0 }
 0x314   :  { %v1046_v52 = vadd.f32 %v1455_v50, %v954_v12  ;;  %v1037_v53 = vpop.f32.mrb[35].mxu0  ;;  %v1067_v59 = vmax.f32 %v1043_v55, 0.0 }
 0x315   :  { %v1038_v58 = vadd.f32 %v1037_v53, %v944_v36  ;;  %v1065_v61 = vmax.f32 %v1035_v40, 0.0 }
 0x316   :  { %v1068_v60 = vmax.f32 %v1046_v52, 0.0 }
 0x317   :  { %v1066_v62 = vmax.f32 %v1038_v58, 0.0 }
 0x318   :  { %v1074_v63 = vpack.c.bf16 %v1068_v60, %v1067_v59 }
 0x319   :  { %v1073_v1 = vpack.c.bf16 %v1066_v62, %v1065_v61  ;;  %v1458_v2 = vpop.f32.mrb[36].mxu0 }
 0x31a   :  { %v1059_v3 = vadd.f32 %v1458_v2, %v969_v0  ;;  %v1050_v4 = vpop.f32.mrb[37].mxu0 }
 0x31b   :  { %v1051_v6 = vadd.f32 %v1050_v4, %v959_v31  ;;  %v1459_v9 = vpop.f32.mrb[38].mxu0  ;;  %1460 = vmatprep.subr.bf16.mxu0 %v1073_v1 }
 0x31c   :  { %v1062_v10 = vadd.f32 %v1459_v9, %v974_v5  ;;  %v1053_v11 = vpop.f32.mrb[39].mxu0  ;;  %1461 = vmatpush3.bf16.msra.mxu0 %v1073_v1  ;;  %v1071_v13 = vmax.f32 %v1059_v3, 0.0 }
 0x31d   :  { %v1054_v21 = vadd.f32 %v1053_v11, %v964_v56  ;;  %1462 = vmatprep.subr.bf16.mxu0 %v1074_v63  ;;  %v1069_v22 = vmax.f32 %v1051_v6, 0.0 }
 0x31e   :  { %v1072_v16 = vmax.f32 %v1062_v10, 0.0 }
 0x31f   :  { %v1070_v18 = vmax.f32 %v1054_v21, 0.0 }
 0x320   :  { %v1076_v14 = vpack.c.bf16 %v1072_v16, %v1071_v13  ;;  %1463 = vmatpush3.bf16.msra.mxu0 %v1074_v63 }
 0x321   :  { %v1075_v15 = vpack.c.bf16 %v1070_v18, %v1069_v22 }
 0x323   :  { %1464 = vmatprep.subr.bf16.mxu0 %v1075_v15 }
 0x324   :  { %1465 = vmatpush3.bf16.msra.mxu0 %v1075_v15 }
 0x325   :  { %1466 = vmatprep.subr.bf16.mxu0 %v1076_v14 }
 0x328   :  { %1467 = vmatpush3.bf16.msra.mxu0 %v1076_v14 }
 0x329   :  { %1472 = vmatprep.subr.bf16.mxu0 %v1558_v20 }
 0x32b   :  { %1469 = vmatmul.mubr.msk.bf16.vlgmr.msra.gmra.mrb[40].mxu0 %vm1115_vm2, %v1532_v17 }
 0x32c   :  { %1476 = vmatprep.mubr.msk.bf16.mxu0 %vm1559_vm3, %v1558_v20 }
 0x3fe   :  { %v1470_v25 = vpop.f32.mrb[40].mxu0 }
 0x3ff   :  { %v1165_v27 = vadd.f32 %v1470_v25, %v1098_v24  ;;  %v1156_v30 = vpop.f32.mrb[41].mxu0 }
 0x400   :  { %v1157_v57 = vadd.f32 %v1156_v30, %v1088_v23  ;;  %v1471_v26 = vpop.f32.mrb[42].mxu0 }
 0x401   :  { %v1168_v32 = vadd.f32 %v1471_v26, %v1103_v28  ;;  %v1159_v39 = vpop.f32.mrb[43].mxu0  ;;  %v1173_v54 = vmax.f32 %v1165_v27, 0.0 }
 0x402   :  { %v1160_v41 = vadd.f32 %v1159_v39, %v1093_v29  ;;  %v1171_v44 = vmax.f32 %v1157_v57, 0.0 }
 0x403   :  { %v1174_v42 = vmax.f32 %v1168_v32, 0.0 }
 0x404   :  { %v1172_v37 = vmax.f32 %v1160_v41, 0.0 }
 0x405   :  { %v1176_v35 = vpack.c.bf16 %v1174_v42, %v1173_v54 }
 0x406   :  { %v1175_v33 = vpack.c.bf16 %v1172_v37, %v1171_v44 }
 0x408   :  { %1473 = vmatpush3.bf16.msra.mxu0 %v1175_v33 }
 0x409   :  { %1474 = vmatprep.subr.bf16.mxu0 %v1558_v20 }
 0x40c   :  { %1475 = vmatpush3.bf16.msra.mxu0 %v1176_v35 }
 0x40f   :  { %1477 = vmatmul.mubr.msk.bf16.vlgmr.msra.gmra.mrb[44].mxu0 %vm1184_vm4, %v1177_v45 }
 0x4e2   :  { %v1222_v43 = vpop.f32.mrb[44].mxu0 }
 0x4e3   :  { %v1223_v8 = vadd.f32 %v1222_v43, %v1182_v38  ;;  %v1478_v34 = vpop.f32.mrb[45].mxu0 }
 0x4e4   :  { %v1225_v46 = vpop.f32.mrb[46].mxu0 }
 0x4e5   :  { %1228 = vst [vmem:[#allocation2] sm:$0xff] %v1223_v8  ;;  %v1479_v47 = vpop.f32.mrb[47].mxu0 }
 0x4e6   :  { %1544 = shalt.err (!%p1541_p4)
}
 0x4e7   :  { %s1545_s21 = scalar_lea.hbm %s2037_s11, 128 }
 0x4e8   :  { %p1546_p5 = scmp.ne.s32.totalorder %s2037_s11, %s1545_s21  ;;  %p1549_p6 = scmp.lt.u32.totalorder %s1545_s21, %s2037_s11 }
 0x4ea   :  { %p1551_p7 = pnand %p1549_p6, %p1546_p5 }
 0x4ec   :  { %1554 = shalt.err (!%p1551_p7)
}
 0x4ed   :  { %1238 = dma.vmem_to_hbm [thread:$0]  %s1236_s19, 128, %s2037_s11, [#allocation3]  }
 0x4ee   :  { %1555 = dma.done.wait [#allocation3], 128  }
 0x4ef   :  { %1556 = vsyncadd [#allocation3], 4294967168 }
 0x4f0   :  { %1242 = vsyncpa [#allocation3], 1 }

</bundles_post_ra>
